<compile_context>
chip_gen: v7x
topology: tpu7x:2x2x1
jax: 0.10.0
libtpu: 0.0.40
codegen_flags: <defaults>
</compile_context>

<pallas_src>
import functools

import numpy as np
import jax
import jax.numpy as jnp
from jax.experimental import pallas as pl
from jax.experimental.pallas import tpu as pltpu

OUT_H = 32
OUT_W = 24
OUT_E = OUT_H * OUT_W          # 768 = 6 * 128 lanes

_VMEM_HEADROOM = 4 << 20       # Mosaic internal scratch / semaphores / slack


def pil_bilinear_weights(in_size: int, out_size: int) -> np.ndarray:
    """(out_size, in_size) row-stochastic matrix matching PIL BILINEAR resize."""
    scale = in_size / out_size
    filterscale = max(scale, 1.0)          # PIL antialiases when downscaling
    support = 1.0 * filterscale            # bilinear filter support = 1
    ss = 1.0 / filterscale
    W = np.zeros((out_size, in_size), dtype=np.float64)
    for xx in range(out_size):
        center = (xx + 0.5) * scale
        xmin = max(int(center - support + 0.5), 0)
        xmax = min(int(center + support + 0.5), in_size)
        ks = []
        for x in range(xmin, xmax):
            w = (x - center + 0.5) * ss
            ks.append(max(0.0, 1.0 - abs(w)))   # triangle filter
        tot = sum(ks)
        assert tot > 0.0, "degenerate resize window (input spatial dim too small)"
        for i, w in enumerate(ks):
            W[xx, xmin + i] = w / tot
    return W


@functools.lru_cache(maxsize=None)
def _kron_resize_matrix(h: int, w: int) -> jnp.ndarray:
    """(H*W, 768) bf16 matrix so that out_flat = x_flat @ K^T per plane."""
    ah = pil_bilinear_weights(h, OUT_H)            # (32, H)
    aw = pil_bilinear_weights(w, OUT_W)            # (24, W)
    k = np.kron(ah, aw)                            # (768, H*W)
    # bf16 operands (f32 accumulation happens on the MXU); weights are in [0,1]
    # and row-stochastic, so the quantization error is ~2^-9 relative.
    return jnp.asarray(k.T, dtype=jnp.bfloat16)    # (H*W, 768)


@functools.lru_cache(maxsize=None)
def _tpu_caps():
    """(vmem_limit_bytes, min_grid_steps) — best-effort generation gating."""
    vmem_limit = 48 << 20    # safe inside v7x's 64 MiB per-TC VMEM
    min_steps = 8            # assume 2 TensorCores (megacore) unless we know better
    try:
        kind = jax.devices()[0].device_kind.lower()
        two_tc = any(t in kind for t in ("v7", "7x", "v4", "v5p"))
        min_steps = 8 if two_tc else 2
        if not any(t in kind for t in ("v7", "7x")):
            vmem_limit = 64 << 20          # v5e/v6e: 128 MiB physical VMEM
    except Exception:
        pass                               # non-fatal: defaults are safe everywhere
    return vmem_limit, min_steps


def _choose_block_planes(n_planes: int, in_elems: int, in_itemsize: int,
                         vmem_limit: int, min_steps: int) -> int:
    """Planes per grid step, sized against VMEM and the MXU M dimension."""
    # Resident K^T: constant index_map, but charge both default pipeline buffers.
    kt_bytes = 2 * in_elems * OUT_E * 2                     # bf16
    tile_budget = max(vmem_limit - kt_bytes - _VMEM_HEADROOM, 1 << 20)
    # Double-buffered input tile at its NATIVE dtype (cast happens in-kernel)
    # plus double-buffered f32 output tile.
    per_plane = 2 * in_elems * in_itemsize + 2 * OUT_E * 4
    p_budget = max(int(tile_budget // per_plane), 8)

    p = min(p_budget, n_planes)
    # Keep >= min_steps grid steps so megacore sharding (v7x) and DMA/compute
    # overlap both have work ...
    p = min(p, pl.cdiv(n_planes, min_steps))
    # ... but never starve the MXU M dimension below 256 rows (or n).
    p = max(p, min(n_planes, 256))
    p = min(p, p_budget, n_planes)
    if p < n_planes:
        p = max(8, (p // 8) * 8)           # sublane-aligned block
    return int(p)


def _resize_kernel(kt_ref, x_ref, o_ref):
    # kt_ref: (H*W, 768) bf16 resident kron(A_h, A_w)^T (constant index_map)
    # x_ref:  (P, H*W)   P flattened input planes (native dtype)
    # o_ref:  (P, 768)   P flattened output planes, lane-dense, float32
    x = x_ref[...].astype(jnp.bfloat16)
    o_ref[...] = jnp.dot(x, kt_ref[...], preferred_element_type=jnp.float32)


@jax.jit
def factored_minigrid_feature_extractor(x: jnp.ndarray) -> jnp.ndarray:
    """x: (B, C, H, W) float array -> (B, C, 32, 24) float32."""
    B, C, H, W = x.shape
    n = B * C
    kt = _kron_resize_matrix(H, W)                 # (H*W, 768) bf16, baked in under jit
    xf = x.reshape(n, H * W)                       # free: contiguous row-major
    vmem_limit, min_steps = _tpu_caps()
    p = _choose_block_planes(n, H * W, x.dtype.itemsize, vmem_limit, min_steps)

    out_flat = pl.pallas_call(
        _resize_kernel,
        out_shape=jax.ShapeDtypeStruct((n, OUT_E), jnp.float32),
        grid=(pl.cdiv(n, p),),
        in_specs=[
            pl.BlockSpec((H * W, OUT_E), lambda i: (0, 0)),   # resident coefficients
            pl.BlockSpec((p, H * W), lambda i: (i, 0)),       # P planes per step
        ],
        out_specs=pl.BlockSpec((p, OUT_E), lambda i: (i, 0)),
        compiler_params=pltpu.CompilerParams(
            dimension_semantics=("parallel",),
            vmem_limit_bytes=vmem_limit,
        ),
    )(kt, xf)

    return out_flat.reshape(B, C, OUT_H, OUT_W)    # free: contiguous row-major


if __name__ == "__main__":
    key = jax.random.PRNGKey(0)
    B, C, H, W = 2, 4, 16, 16
    x = jax.random.uniform(key, (B, C, H, W), dtype=jnp.float32) * 255.0

    out = jax.block_until_ready(factored_minigrid_feature_extractor(x))

    # Pure-JAX f32 reference of the same separable bilinear resize.
    # TODO(synk): exact bit-for-bit PIL parity would require PIL's per-stage
    # rounding path on integer image modes; float ('F'-mode) inputs match.
    ah = jnp.asarray(pil_bilinear_weights(H, OUT_H), jnp.float32)
    aw = jnp.asarray(pil_bilinear_weights(W, OUT_W), jnp.float32)
    ref = jnp.einsum("oh,bchw,qw->bcoq", ah, x, aw)

    assert out.shape == (B, C, OUT_H, OUT_W)
    assert out.dtype == jnp.float32
    # bf16 operands with f32 accumulation: ~2^-9 relative error per term on
    # 0-255 inputs -> <= ~1.0 absolute; tolerance relaxed accordingly.
    np.testing.assert_allclose(np.asarray(out), np.asarray(ref), rtol=1e-2, atol=1.5)

    print("KERNEL_OK")
</pallas_src>

<mosaic_0001>
module attributes {stable_mosaic.version = 11 : i64} {
  func.func @_resize_kernel(%arg0: i32, %arg1: memref<256x768xbf16, #tpu.memory_space<vmem>>, %arg2: memref<8x256xf32, #tpu.memory_space<vmem>>, %arg3: memref<8x768xf32, #tpu.memory_space<vmem>>) attributes {dimension_semantics = [#tpu.dimension_semantics<parallel>], iteration_bounds = array<i64: 1>, scalar_prefetch = 0 : i64, scratch_operands = 0 : i64, tpu.core_type = #tpu.core_type<tc>, window_params = [{pipeline_mode = #tpu.pipeline_mode<synchronous>, transform_indices = @transform_0, window_bounds = array<i64: 256, 768>}, {transform_indices = @transform_1, window_bounds = array<i64: 8, 256>}, {transform_indices = @transform_2, window_bounds = array<i64: 8, 768>}]} {
    %c0 = arith.constant 0 : index
    %c0_0 = arith.constant 0 : index
    %0 = vector.load %arg2[%c0, %c0_0] : memref<8x256xf32, #tpu.memory_space<vmem>>, vector<8x256xf32>
    %1 = arith.truncf %0 : vector<8x256xf32> to vector<8x256xbf16>
    %c0_1 = arith.constant 0 : index
    %c0_2 = arith.constant 0 : index
    %2 = vector.load %arg1[%c0_1, %c0_2] : memref<256x768xbf16, #tpu.memory_space<vmem>>, vector<256x768xbf16>
    %cst = arith.constant dense<0.000000e+00> : vector<8x768xf32>
    %3 = tpu.matmul %1, %2, %cst {dimension_numbers = #tpu.dot_dimension_numbers<[1], [0], [0], [1], [0, 0, 1, 1], [], []>} : vector<8x256xbf16>, vector<256x768xbf16>, vector<8x768xf32> -> vector<8x768xf32>
    %c0_3 = arith.constant 0 : index
    %c0_4 = arith.constant 0 : index
    %4 = vector.load %arg3[%c0_3, %c0_4] : memref<8x768xf32, #tpu.memory_space<vmem>>, vector<8x768xf32>
    tpu.vector_store %arg3[%c0_3, %c0_4], %3 {strides = array<i32>} : memref<8x768xf32, #tpu.memory_space<vmem>>, vector<8x768xf32>,
    return
  }
  func.func @transform_0(%arg0: i32) -> (i32, i32) {
    %c0_i32 = arith.constant 0 : i32
    %c0_i32_0 = arith.constant 0 : i32
    %c0_i32_1 = arith.constant 0 : i32
    return %c0_i32, %c0_i32_0 : i32, i32
  }
  func.func @transform_1(%arg0: i32) -> (i32, i32) {
    %c0_i32 = arith.constant 0 : i32
    %c0_i32_0 = arith.constant 0 : i32
    return %arg0, %c0_i32 : i32, i32
  }
  func.func @transform_2(%arg0: i32) -> (i32, i32) {
    %c0_i32 = arith.constant 0 : i32
    %c0_i32_0 = arith.constant 0 : i32
    return %arg0, %c0_i32 : i32, i32
  }
}

</mosaic_0001>

<bundles_post_ra>
// kernel: factored_minigrid_feature_extractor.1
= control target key start
LH: loop header
LB: loop body
LE: loop exit
PB: predicated region body
PF: predicated region fallthrough
CT: control target
= control target key end

     0   :  { %7 = vsyncpa [#allocation3], 0  ;;  %s1146_s0 = inlined_call_operand.hbm [shape: bf16[256,768], index: 0, kind: input, shape index: {}]   ;;  %s1147_s1 = inlined_call_operand.hbm [shape: f32[8,256], index: 1, kind: input, shape index: {}]   ;;  %s1148_s2 = inlined_call_operand.hbm [shape: f32[8,768], index: 2, kind: output, shape index: {}]  }
   0x1   :  { %8 = vsyncpa [#allocation6], 0 }
   0x2   :  { %9 = vsyncpa [#allocation4], 0  ;;  %s1080_s9 = smov [#allocation2]   ;;  %s1008_s13 = scalar_lea.hbm %s1146_s0, 12288 }
   0x3   :  { %s15_s10 = sshll.u32 %s1080_s9, 4  ;;  %p1009_p0 = scmp.ne.s32.totalorder %s1146_s0, %s1008_s13  ;;  %s16_s10 = int_to_ptr.vmem [resolvable:$true] %s15_s10 }
   0x4   :  { %p1012_p1 = scmp.lt.u32.totalorder %s1008_s13, %s1146_s0 }
   0x6   :  { %p1014_p2 = pnand %p1012_p1, %p1009_p0 }
   0x8   :  { %1017 = shalt.err (!%p1014_p2)
}
   0x9   :  { %s1018_s18 = scalar_lea.vmem %s16_s10, 12288  ;;  %p1023_p4 = scmp.lt.s32.totalorder %s16_s10, %s16_s10 }
   0xa   :  { %p1019_p3 = scmp.ne.s32.totalorder %s16_s10, %s1018_s18  ;;  %p1024_p5 = scmp.lt.s32.totalorder %s1018_s18, %s1018_s18 }
   0xc   :  { %p1025_p6 = por %p1024_p5, %p1023_p4 }
   0xe   :  { %p1026_p7 = pnand %p1025_p6, %p1019_p3 }
  0x10   :  { %1029 = shalt.err (!%p1026_p7)
}
  0x11   :  { %s1081_s19 = smov 384   ;;  %s1082_s20 = smov 24  }
  0x12   :  { %21 = dma.hbm_to_vmem [thread:$0]  %s1146_s0, 12288, %s16_s10, [#allocation3], %s1081_s19, %s1081_s19, %s1082_s20  }
  0x13   :  { %s1083_s23 = smov [#allocation5]   ;;  %s1030_s27 = scalar_lea.hbm %s1147_s1, 256 }
  0x14   :  { %s28_s24 = sshll.u32 %s1083_s23, 4  ;;  %p1031_p8 = scmp.ne.s32.totalorder %s1147_s1, %s1030_s27  ;;  %s29_s24 = int_to_ptr.vmem [resolvable:$true] %s28_s24 }
  0x15   :  { %p1034_p9 = scmp.lt.u32.totalorder %s1030_s27, %s1147_s1 }
  0x17   :  { %p1036_p10 = pnand %p1034_p9, %p1031_p8 }
  0x19   :  { %1039 = shalt.err (!%p1036_p10)
}
  0x1a   :  { %s1040_s4 = scalar_lea.vmem %s29_s24, 256  ;;  %p1045_p12 = scmp.lt.s32.totalorder %s29_s24, %s29_s24 }
  0x1b   :  { %p1041_p11 = scmp.ne.s32.totalorder %s29_s24, %s1040_s4  ;;  %p1046_p13 = scmp.lt.s32.totalorder %s1040_s4, %s1040_s4 }
  0x1d   :  { %p1047_p0 = por %p1046_p13, %p1045_p12 }
  0x1f   :  { %p1048_p1 = pnand %p1047_p0, %p1041_p11 }
  0x21   :  { %1051 = shalt.err (!%p1048_p1)
}
  0x22   :  { %31 = dma.hbm_to_vmem [thread:$0]  %s1147_s1, 256, %s29_s24, [#allocation6]  }
  0x23   :  { %1074 = dma.done.wait [#allocation3], 12288  }
  0x24   :  { %1075 = vsyncadd [#allocation3], 4294955008 }
  0x25   :  { %1076 = dma.done.wait [#allocation6], 256  }
  0x26   :  { %1077 = vsyncadd [#allocation6], 4294967040  ;;  %v864_v0 = vld [vmem:[#allocation2 + $0x4] ss:$24 sps:$4 sm:$0xff]   ;;  %v866_v1 = vld [vmem:[#allocation2] ss:$24 sps:$4 sm:$0xff]  }
  0x27   :  { %618 = vmatprep.subr.bf16.mxu0 %v864_v0  ;;  %v867_v2 = vld [vmem:[#allocation2 + $0x34] ss:$24 sps:$4 sm:$0xff]   ;;  %v869_v3 = vld [vmem:[#allocation2 + $0x30] ss:$24 sps:$4 sm:$0xff]   ;;  %v870_v4 = vld [vmem:[#allocation2 + $0x64] ss:$24 sps:$4 sm:$0xff]  }
  0x28   :  { %619 = vmatpush1.bf16.msra.mxu0 %v866_v1  ;;  %v872_v5 = vld [vmem:[#allocation2 + $0x60] ss:$24 sps:$4 sm:$0xff]   ;;  %v873_v6 = vld [vmem:[#allocation2 + $0x94] ss:$24 sps:$4 sm:$0xff]   ;;  %v875_v7 = vld [vmem:[#allocation2 + $0x90] ss:$24 sps:$4 sm:$0xff]  }
  0x29   :  { %620 = vmatprep.subr.bf16.mxu0 %v867_v2  ;;  %v876_v8 = vld [vmem:[#allocation2 + $0xc4] ss:$24 sps:$4 sm:$0xff]   ;;  %v878_v9 = vld [vmem:[#allocation2 + $0xc0] ss:$24 sps:$4 sm:$0xff]   ;;  %v879_v10 = vld [vmem:[#allocation2 + $0xf4] ss:$24 sps:$4 sm:$0xff]  }
  0x2a   :  { %v881_v11 = vld [vmem:[#allocation2 + $0xf0] ss:$24 sps:$4 sm:$0xff]   ;;  %v882_v12 = vld [vmem:[#allocation2 + $0x124] ss:$24 sps:$4 sm:$0xff]   ;;  %v884_v16 = vld [vmem:[#allocation2 + $0x120] ss:$24 sps:$4 sm:$0xff]  }
  0x2b   :  { %v912_v13 = vld [vmem:[#allocation2 + $0xc] ss:$24 sps:$4 sm:$0xff]   ;;  %v914_v14 = vld [vmem:[#allocation2 + $0x8] ss:$24 sps:$4 sm:$0xff]   ;;  %v918_v19 = vld [vmem:[#allocation2 + $0x3c] ss:$24 sps:$4 sm:$0xff]  }
  0x2c   :  { %621 = vmatpush1.bf16.msra.mxu0 %v869_v3  ;;  %v39_v15 = vld [vmem:[#allocation5 + $0x8] sm:$0xff]  ;;  %659 = vmatprep.subr.bf16.mxu1 %v912_v13  ;;  %v920_v20 = vld [vmem:[#allocation2 + $0x38] ss:$24 sps:$4 sm:$0xff]   ;;  %v888_v22 = vld [vmem:[#allocation2 + $0x184] ss:$24 sps:$4 sm:$0xff]   ;;  %s1084_s1 = smov [#allocation7]  }
  0x2d   :  { %622 = vmatprep.subr.bf16.mxu0 %v870_v4  ;;  %v1124_v17 = vpack.c.bf16 %v39_v15, %v39_v15  ;;  %v885_v18 = vld [vmem:[#allocation2 + $0x154] ss:$24 sps:$4 sm:$0xff]   ;;  %660 = vmatpush1.bf16.msra.mxu1 %v914_v14  ;;  %v887_v21 = vld [vmem:[#allocation2 + $0x150] ss:$24 sps:$4 sm:$0xff]   ;;  %v890_v26 = vld [vmem:[#allocation2 + $0x180] ss:$24 sps:$4 sm:$0xff]  }
  0x2e   :  { %661 = vmatprep.subr.bf16.mxu1 %v918_v19  ;;  %v924_v23 = vld [vmem:[#allocation2 + $0x6c] ss:$24 sps:$4 sm:$0xff]   ;;  %v926_v24 = vld [vmem:[#allocation2 + $0x68] ss:$24 sps:$4 sm:$0xff]   ;;  %v930_v25 = vld [vmem:[#allocation2 + $0x9c] ss:$24 sps:$4 sm:$0xff]  }
  0x2f   :  { %650 = vmatprep.mubr.bf16.mxu0 %v1124_v17  ;;  %691 = vmatprep.mubr.bf16.mxu1 %v1124_v17  ;;  %v891_v27 = vld [vmem:[#allocation2 + $0x1b4] ss:$24 sps:$4 sm:$0xff]   ;;  %v932_v28 = vld [vmem:[#allocation2 + $0x98] ss:$24 sps:$4 sm:$0xff]   ;;  %v894_v31 = vld [vmem:[#allocation2 + $0x1e4] ss:$24 sps:$4 sm:$0xff]  }
  0x30   :  { %623 = vmatpush1.bf16.msra.mxu0 %v872_v5  ;;  %v936_v29 = vld [vmem:[#allocation2 + $0xcc] ss:$24 sps:$4 sm:$0xff]   ;;  %v893_v30 = vld [vmem:[#allocation2 + $0x1b0] ss:$24 sps:$4 sm:$0xff]   ;;  %v942_v33 = vld [vmem:[#allocation2 + $0xfc] ss:$24 sps:$4 sm:$0xff]  }
  0x31   :  { %624 = vmatprep.subr.bf16.mxu0 %v873_v6  ;;  %662 = vmatpush1.bf16.msra.mxu1 %v920_v20  ;;  %v938_v32 = vld [vmem:[#allocation2 + $0xc8] ss:$24 sps:$4 sm:$0xff]   ;;  %v897_v35 = vld [vmem:[#allocation2 + $0x214] ss:$24 sps:$4 sm:$0xff]   ;;  %v944_v36 = vld [vmem:[#allocation2 + $0xf8] ss:$24 sps:$4 sm:$0xff]  }
  0x32   :  { %663 = vmatprep.subr.bf16.mxu1 %v924_v23  ;;  %v896_v34 = vld [vmem:[#allocation2 + $0x1e0] ss:$24 sps:$4 sm:$0xff]   ;;  %v948_v37 = vld [vmem:[#allocation2 + $0x12c] ss:$24 sps:$4 sm:$0xff]   ;;  %v899_v38 = vld [vmem:[#allocation2 + $0x210] ss:$24 sps:$4 sm:$0xff]  }
  0x33   :  { %v900_v39 = vld [vmem:[#allocation2 + $0x244] ss:$24 sps:$4 sm:$0xff]   ;;  %v950_v40 = vld [vmem:[#allocation2 + $0x128] ss:$24 sps:$4 sm:$0xff]   ;;  %v903_v43 = vld [vmem:[#allocation2 + $0x274] ss:$24 sps:$4 sm:$0xff]  }
  0x34   :  { %625 = vmatpush1.bf16.msra.mxu0 %v875_v7  ;;  %v954_v41 = vld [vmem:[#allocation2 + $0x15c] ss:$24 sps:$4 sm:$0xff]   ;;  %v902_v42 = vld [vmem:[#allocation2 + $0x240] ss:$24 sps:$4 sm:$0xff]   ;;  %v960_v45 = vld [vmem:[#allocation2 + $0x18c] ss:$24 sps:$4 sm:$0xff]  }
  0x35   :  { %626 = vmatprep.subr.bf16.mxu0 %v876_v8  ;;  %664 = vmatpush1.bf16.msra.mxu1 %v926_v24  ;;  %v956_v44 = vld [vmem:[#allocation2 + $0x158] ss:$24 sps:$4 sm:$0xff]   ;;  %v906_v47 = vld [vmem:[#allocation2 + $0x2a4] ss:$24 sps:$4 sm:$0xff]   ;;  %v962_v48 = vld [vmem:[#allocation2 + $0x188] ss:$24 sps:$4 sm:$0xff]  }
  0x36   :  { %665 = vmatprep.subr.bf16.mxu1 %v930_v25  ;;  %v905_v46 = vld [vmem:[#allocation2 + $0x270] ss:$24 sps:$4 sm:$0xff]   ;;  %v966_v49 = vld [vmem:[#allocation2 + $0x1bc] ss:$24 sps:$4 sm:$0xff]   ;;  %v908_v50 = vld [vmem:[#allocation2 + $0x2a0] ss:$24 sps:$4 sm:$0xff]  }
  0x37   :  { %v909_v51 = vld [vmem:[#allocation2 + $0x2d4] ss:$24 sps:$4 sm:$0xff]   ;;  %v911_v52 = vld [vmem:[#allocation2 + $0x2d0] ss:$24 sps:$4 sm:$0xff]   ;;  %v38_v55 = vld [vmem:[#allocation5] sm:$0xff]  ;;  %s753_s6 = sshll.u32 %s1084_s1, 4  ;;  %s754_s6 = int_to_ptr.vmem [resolvable:$true] %s753_s6 }
  0x38   :  { %627 = vmatpush1.bf16.msra.mxu0 %v878_v9  ;;  %v968_v53 = vld [vmem:[#allocation2 + $0x1b8] ss:$24 sps:$4 sm:$0xff]   ;;  %v972_v54 = vld [vmem:[#allocation2 + $0x1ec] ss:$24 sps:$4 sm:$0xff]   ;;  %v974_v57 = vld [vmem:[#allocation2 + $0x1e8] ss:$24 sps:$4 sm:$0xff]   ;;  %v1128_v58 = vpack.c.bf16 %v38_v55, %v38_v55  ;;  %p1057_p3 = scmp.lt.s32.totalorder %s754_s6, %s754_s6 }
  0x39   :  { %628 = vmatprep.subr.bf16.mxu0 %v879_v10  ;;  %666 = vmatpush1.bf16.msra.mxu1 %v932_v28  ;;  %v917_v56 = vld [vmem:[#allocation2 + $0x14] ss:$24 sps:$4 sm:$0xff]   ;;  %v915_v60 = vld [vmem:[#allocation2 + $0x10] ss:$24 sps:$4 sm:$0xff]   ;;  %v923_v61 = vld [vmem:[#allocation2 + $0x44] ss:$24 sps:$4 sm:$0xff]  }
  0x3a   :  { %667 = vmatprep.subr.bf16.mxu1 %v936_v29  ;;  %v978_v59 = vld [vmem:[#allocation2 + $0x21c] ss:$24 sps:$4 sm:$0xff]   ;;  %v980_v62 = vld [vmem:[#allocation2 + $0x218] ss:$24 sps:$4 sm:$0xff]   ;;  %v984_v63 = vld [vmem:[#allocation2 + $0x24c] ss:$24 sps:$4 sm:$0xff]  }
  0x3b   :  { %v921_v0 = vld [vmem:[#allocation2 + $0x40] ss:$24 sps:$4 sm:$0xff]   ;;  %v929_v1 = vld [vmem:[#allocation2 + $0x74] ss:$24 sps:$4 sm:$0xff]   ;;  %v927_v4 = vld [vmem:[#allocation2 + $0x70] ss:$24 sps:$4 sm:$0xff]  }
  0x3c   :  { %629 = vmatpush1.bf16.msra.mxu0 %v881_v11  ;;  %v986_v2 = vld [vmem:[#allocation2 + $0x248] ss:$24 sps:$4 sm:$0xff]   ;;  %v990_v3 = vld [vmem:[#allocation2 + $0x27c] ss:$24 sps:$4 sm:$0xff]   ;;  %v992_v6 = vld [vmem:[#allocation2 + $0x278] ss:$24 sps:$4 sm:$0xff]  }
  0x3d   :  { %630 = vmatprep.subr.bf16.mxu0 %v882_v12  ;;  %668 = vmatpush1.bf16.msra.mxu1 %v938_v32  ;;  %v935_v5 = vld [vmem:[#allocation2 + $0xa4] ss:$24 sps:$4 sm:$0xff]   ;;  %v933_v8 = vld [vmem:[#allocation2 + $0xa0] ss:$24 sps:$4 sm:$0xff]   ;;  %v941_v9 = vld [vmem:[#allocation2 + $0xd4] ss:$24 sps:$4 sm:$0xff]  }
  0x3e   :  { %669 = vmatprep.subr.bf16.mxu1 %v942_v33  ;;  %v996_v7 = vld [vmem:[#allocation2 + $0x2ac] ss:$24 sps:$4 sm:$0xff]   ;;  %v998_v10 = vld [vmem:[#allocation2 + $0x2a8] ss:$24 sps:$4 sm:$0xff]   ;;  %v1002_v11 = vld [vmem:[#allocation2 + $0x2dc] ss:$24 sps:$4 sm:$0xff]  }
  0x3f   :  { %v939_v12 = vld [vmem:[#allocation2 + $0xd0] ss:$24 sps:$4 sm:$0xff]   ;;  %v947_v13 = vld [vmem:[#allocation2 + $0x104] ss:$24 sps:$4 sm:$0xff]   ;;  %v945_v15 = vld [vmem:[#allocation2 + $0x100] ss:$24 sps:$4 sm:$0xff]  }
  0x40   :  { %631 = vmatpush1.bf16.msra.mxu0 %v884_v16  ;;  %v1004_v14 = vld [vmem:[#allocation2 + $0x2d8] ss:$24 sps:$4 sm:$0xff]   ;;  %v953_v16 = vld [vmem:[#allocation2 + $0x134] ss:$24 sps:$4 sm:$0xff]   ;;  %s1052_s7 = scalar_lea.vmem %s754_s6, 768 }
  0x41   :  { %632 = vmatprep.subr.bf16.mxu0 %v885_v18  ;;  %670 = vmatpush1.bf16.msra.mxu1 %v944_v36  ;;  %v959_v18 = vld [vmem:[#allocation2 + $0x164] ss:$24 sps:$4 sm:$0xff]   ;;  %v957_v19 = vld [vmem:[#allocation2 + $0x160] ss:$24 sps:$4 sm:$0xff]   ;;  %v965_v20 = vld [vmem:[#allocation2 + $0x194] ss:$24 sps:$4 sm:$0xff]   ;;  %p1053_p2 = scmp.ne.s32.totalorder %s754_s6, %s1052_s7  ;;  %p1058_p4 = scmp.lt.s32.totalorder %s1052_s7, %s1052_s7 }
  0x42   :  { %671 = vmatprep.subr.bf16.mxu1 %v948_v37  ;;  %v969_v23 = vld [vmem:[#allocation2 + $0x1c0] ss:$24 sps:$4 sm:$0xff]   ;;  %v977_v24 = vld [vmem:[#allocation2 + $0x1f4] ss:$24 sps:$4 sm:$0xff]   ;;  %v975_v25 = vld [vmem:[#allocation2 + $0x1f0] ss:$24 sps:$4 sm:$0xff]  }
  0x43   :  { %v989_v28 = vld [vmem:[#allocation2 + $0x254] ss:$24 sps:$4 sm:$0xff]   ;;  %v987_v29 = vld [vmem:[#allocation2 + $0x250] ss:$24 sps:$4 sm:$0xff]   ;;  %p1059_p5 = por %p1058_p4, %p1057_p3 }
  0x44   :  { %633 = vmatpush1.bf16.msra.mxu0 %v887_v21  ;;  %v963_v21 = vld [vmem:[#allocation2 + $0x190] ss:$24 sps:$4 sm:$0xff]   ;;  %v1001_v32 = vld [vmem:[#allocation2 + $0x2b4] ss:$24 sps:$4 sm:$0xff]  }
  0x45   :  { %634 = vmatprep.subr.bf16.mxu0 %v888_v22  ;;  %672 = vmatpush1.bf16.msra.mxu1 %v950_v40  ;;  %v971_v22 = vld [vmem:[#allocation2 + $0x1c4] ss:$24 sps:$4 sm:$0xff]   ;;  %v999_v33 = vld [vmem:[#allocation2 + $0x2b0] ss:$24 sps:$4 sm:$0xff]   ;;  %p1060_p6 = pnand %p1059_p5, %p1053_p2 }
  0x46   :  { %673 = vmatprep.subr.bf16.mxu1 %v954_v41 }
  0x48   :  { %635 = vmatpush1.bf16.msra.mxu0 %v890_v26  ;;  %v983_v26 = vld [vmem:[#allocation2 + $0x224] ss:$24 sps:$4 sm:$0xff]  }
  0x49   :  { %636 = vmatprep.subr.bf16.mxu0 %v891_v27  ;;  %674 = vmatpush1.bf16.msra.mxu1 %v956_v44  ;;  %v981_v27 = vld [vmem:[#allocation2 + $0x220] ss:$24 sps:$4 sm:$0xff]  }
  0x4a   :  { %675 = vmatprep.subr.bf16.mxu1 %v960_v45 }
  0x4c   :  { %637 = vmatpush1.bf16.msra.mxu0 %v893_v30  ;;  %v995_v30 = vld [vmem:[#allocation2 + $0x284] ss:$24 sps:$4 sm:$0xff]  }
  0x4d   :  { %638 = vmatprep.subr.bf16.mxu0 %v894_v31  ;;  %676 = vmatpush1.bf16.msra.mxu1 %v962_v48  ;;  %v993_v31 = vld [vmem:[#allocation2 + $0x280] ss:$24 sps:$4 sm:$0xff]  }
  0x4e   :  { %677 = vmatprep.subr.bf16.mxu1 %v966_v49 }
  0x50   :  { %639 = vmatpush1.bf16.msra.mxu0 %v896_v34  ;;  %v1007_v34 = vld [vmem:[#allocation2 + $0x2e4] ss:$24 sps:$4 sm:$0xff]  }
  0x51   :  { %640 = vmatprep.subr.bf16.mxu0 %v897_v35  ;;  %678 = vmatpush1.bf16.msra.mxu1 %v968_v53  ;;  %v1005_v35 = vld [vmem:[#allocation2 + $0x2e0] ss:$24 sps:$4 sm:$0xff]  }
  0x52   :  { %679 = vmatprep.subr.bf16.mxu1 %v972_v54 }
  0x54   :  { %641 = vmatpush1.bf16.msra.mxu0 %v899_v38 }
  0x55   :  { %642 = vmatprep.subr.bf16.mxu0 %v900_v39  ;;  %680 = vmatpush1.bf16.msra.mxu1 %v974_v57 }
  0x56   :  { %681 = vmatprep.subr.bf16.mxu1 %v978_v59 }
  0x58   :  { %643 = vmatpush1.bf16.msra.mxu0 %v902_v42 }
  0x59   :  { %644 = vmatprep.subr.bf16.mxu0 %v903_v43  ;;  %682 = vmatpush1.bf16.msra.mxu1 %v980_v62 }
  0x5a   :  { %683 = vmatprep.subr.bf16.mxu1 %v984_v63 }
  0x5c   :  { %645 = vmatpush1.bf16.msra.mxu0 %v905_v46 }
  0x5d   :  { %646 = vmatprep.subr.bf16.mxu0 %v906_v47  ;;  %684 = vmatpush1.bf16.msra.mxu1 %v986_v2 }
  0x5e   :  { %685 = vmatprep.subr.bf16.mxu1 %v990_v3 }
  0x60   :  { %647 = vmatpush1.bf16.msra.mxu0 %v908_v50 }
  0x61   :  { %648 = vmatprep.subr.bf16.mxu0 %v909_v51  ;;  %686 = vmatpush1.bf16.msra.mxu1 %v992_v6 }
  0x62   :  { %687 = vmatprep.subr.bf16.mxu1 %v996_v7 }
  0x64   :  { %649 = vmatpush1.bf16.msra.mxu0 %v911_v52 }
  0x65   :  { %700 = vmatprep.subr.bf16.mxu0 %v917_v56  ;;  %688 = vmatpush1.bf16.msra.mxu1 %v998_v10 }
  0x66   :  { %689 = vmatprep.subr.bf16.mxu1 %v1002_v11 }
  0x67   :  { %651 = vmatmul.mubr.bf16.vlgmr.msra.gmra.mrb[0].mxu0 %v1128_v58 }
  0x68   :  { %701 = vmatpush1.bf16.msra.mxu0 %v915_v60  ;;  %732 = vmatprep.mubr.bf16.mxu0 %v1124_v17  ;;  %v951_v17 = vld [vmem:[#allocation2 + $0x130] ss:$24 sps:$4 sm:$0xff]  }
  0x69   :  { %702 = vmatprep.subr.bf16.mxu0 %v923_v61  ;;  %690 = vmatpush1.bf16.msra.mxu1 %v1004_v14 }
  0x6c   :  { %703 = vmatpush1.bf16.msra.mxu0 %v921_v0  ;;  %692 = vmatmul.mubr.bf16.vlgmr.msra.gmra.mrb[0].mxu1 %v1128_v58 }
  0x6d   :  { %704 = vmatprep.subr.bf16.mxu0 %v929_v1 }
  0x70   :  { %705 = vmatpush1.bf16.msra.mxu0 %v927_v4 }
  0x71   :  { %706 = vmatprep.subr.bf16.mxu0 %v935_v5 }
  0x74   :  { %707 = vmatpush1.bf16.msra.mxu0 %v933_v8 }
  0x75   :  { %708 = vmatprep.subr.bf16.mxu0 %v941_v9 }
  0x78   :  { %709 = vmatpush1.bf16.msra.mxu0 %v939_v12 }
  0x79   :  { %710 = vmatprep.subr.bf16.mxu0 %v947_v13 }
  0x7c   :  { %711 = vmatpush1.bf16.msra.mxu0 %v945_v15 }
  0x7d   :  { %712 = vmatprep.subr.bf16.mxu0 %v953_v16 }
  0x80   :  { %713 = vmatpush1.bf16.msra.mxu0 %v951_v17 }
  0x81   :  { %714 = vmatprep.subr.bf16.mxu0 %v959_v18 }
  0x84   :  { %715 = vmatpush1.bf16.msra.mxu0 %v957_v19 }
  0x85   :  { %716 = vmatprep.subr.bf16.mxu0 %v965_v20 }
  0x88   :  { %717 = vmatpush1.bf16.msra.mxu0 %v963_v21 }
  0x89   :  { %718 = vmatprep.subr.bf16.mxu0 %v971_v22 }
  0x8c   :  { %719 = vmatpush1.bf16.msra.mxu0 %v969_v23 }
  0x8d   :  { %720 = vmatprep.subr.bf16.mxu0 %v977_v24 }
  0x90   :  { %721 = vmatpush1.bf16.msra.mxu0 %v975_v25 }
  0x91   :  { %722 = vmatprep.subr.bf16.mxu0 %v983_v26 }
  0x94   :  { %723 = vmatpush1.bf16.msra.mxu0 %v981_v27 }
  0x95   :  { %724 = vmatprep.subr.bf16.mxu0 %v989_v28 }
  0x98   :  { %725 = vmatpush1.bf16.msra.mxu0 %v987_v29 }
  0x99   :  { %726 = vmatprep.subr.bf16.mxu0 %v995_v30 }
  0x9c   :  { %727 = vmatpush1.bf16.msra.mxu0 %v993_v31 }
  0x9d   :  { %728 = vmatprep.subr.bf16.mxu0 %v1001_v32 }
  0xa0   :  { %729 = vmatpush1.bf16.msra.mxu0 %v999_v33 }
  0xa1   :  { %730 = vmatprep.subr.bf16.mxu0 %v1007_v34 }
  0xa4   :  { %731 = vmatpush1.bf16.msra.mxu0 %v1005_v35 }
  0xa7   :  { %733 = vmatmul.mubr.bf16.vlgmr.msra.gmra.mrb[4].mxu0 %v1128_v58 }
 0x13a   :  { %v652_v36 = vpop.f32.mrb[0].mxu0 }
 0x13b   :  { %741 = vst [vmem:[#allocation7] sm:$0xff] %v652_v36  ;;  %v654_v37 = vpop.f32.mrb[1].mxu0 }
 0x13c   :  { %742 = vst [vmem:[#allocation7 + $0x8] sm:$0xff] %v654_v37  ;;  %v656_v38 = vpop.f32.mrb[2].mxu0 }
 0x13d   :  { %v657_v39 = vpop.f32.mrb[3].mxu0 }
 0x13f   :  { %v693_v40 = vpop.f32.mrb[0].mxu1 }
 0x140   :  { %743 = vst [vmem:[#allocation7 + $0x10] sm:$0xff] %v693_v40  ;;  %v695_v41 = vpop.f32.mrb[1].mxu1 }
 0x141   :  { %744 = vst [vmem:[#allocation7 + $0x18] sm:$0xff] %v695_v41  ;;  %v697_v42 = vpop.f32.mrb[2].mxu1 }
 0x142   :  { %v698_v43 = vpop.f32.mrb[3].mxu1 }
 0x17a   :  { %v734_v44 = vpop.f32.mrb[4].mxu0 }
 0x17b   :  { %745 = vst [vmem:[#allocation7 + $0x20] sm:$0xff] %v734_v44  ;;  %v736_v45 = vpop.f32.mrb[5].mxu0 }
 0x17c   :  { %746 = vst [vmem:[#allocation7 + $0x28] sm:$0xff] %v736_v45  ;;  %v738_v46 = vpop.f32.mrb[6].mxu0 }
 0x17d   :  { %v739_v47 = vpop.f32.mrb[7].mxu0 }
 0x17e   :  { %1063 = shalt.err (!%p1060_p6)
}
 0x17f   :  { %s1064_s10 = scalar_lea.hbm %s1148_s2, 768 }
 0x180   :  { %p1065_p7 = scmp.ne.s32.totalorder %s1148_s2, %s1064_s10  ;;  %p1068_p8 = scmp.lt.u32.totalorder %s1064_s10, %s1148_s2 }
 0x182   :  { %p1070_p9 = pnand %p1068_p8, %p1065_p7 }
 0x184   :  { %1073 = shalt.err (!%p1070_p9)
}
 0x185   :  { %756 = dma.vmem_to_hbm [thread:$0]  %s754_s6, 768, %s1148_s2, [#allocation4]  }
 0x186   :  { %1078 = dma.done.wait [#allocation4], 768  }
 0x187   :  { %1079 = vsyncadd [#allocation4], 4294966528 }
 0x188   :  { %760 = vsyncpa [#allocation3], 1 }
 0x189   :  { %761 = vsyncpa [#allocation6], 1 }
 0x18a   :  { %762 = vsyncpa [#allocation4], 1 }

</bundles_post_ra>
